<compile_context>
chip_gen: v5e
topology: v5e:2x2
jax: 0.10.0
libtpu: 0.0.40
codegen_flags: <defaults>
</compile_context>

<pallas_src>
import math

import jax
import jax.numpy as jnp
import numpy as np
from jax.experimental import pallas as pl
from jax.experimental.pallas import tpu as pltpu

# ----------------------------- configuration -------------------------------
# (mirrors the WindowAttention.__init__ args that matter for this forward path)
DIM = 32                    # `dim`
HEADS = 2                   # `heads`
HEAD_DIM = 16               # `head_dim`
INNER = HEADS * HEAD_DIM    # inner_dim = 32
WINDOW = 4                  # `window_size`
SHIFTED = True              # `shifted`
REL_POS = True              # `relative_pos_embedding`
SCALE1 = True               # `scale1`
MASK_FLAG = True            # ctor arg `mask` -> MASK=True inside create_mask
WIN_LEN = 16                # `win_len` (>= N), sparse=None -> lower-tri mask
PROB = True                 # take the self.attn(...) branch
B = 2
N = 16                      # sequence length (n)
NEW_P = N // WINDOW         # number of "patches" per window position
DISPLACEMENT = WINDOW // 2
SCALE = HEAD_DIM ** (-0.5)
BN = B * N                  # total tokens in one call (32)

NEG_MASK = -1000000000.0                                   # module's -1e9
QK_CONST = SCALE * ((1.0 / math.sqrt(HEAD_DIM)) if SCALE1 else 1.0)

# ---- packed constant-slab column layout (single lane-dense operand) --------
SLAB_COLS = 256                 # two full 128-lane vregs wide, zero padded
WQKV_LO, WQKV_HI = 0, 96        # to_qkv weight (DIM, 3*INNER), 128-aligned
QPERM_LO, QPERM_HI = 96, 128    # fused output permutation Q = p_back @ p_win
BIAS_LO, BIAS_HI = 128, 160     # conjugated additive bias (BN, BN), aligned
WOUT_LO, WOUT_HI = 160, 192     # to_out weight (INNER, DIM)
BOUT_LO, BOUT_HI = 192, 224     # to_out bias broadcast to all BN rows

_FLOPS = (2 * BN * DIM * 3 * INNER                        # to_qkv
          + HEADS * (2 * BN * BN * HEAD_DIM               # q @ k^T
                     + 2 * BN * BN * HEAD_DIM             # p @ v
                     + 2 * BN * HEAD_DIM * DIM)           # per-head to_out
          + 2 * BN * BN * DIM)                            # output permutation
_TRANSCENDENTALS = HEADS * (BN * BN + BN)                 # exp + reciprocal
_BYTES_ACCESSED = 4 * (BN * DIM + BN * SLAB_COLS + BN * DIM)


# ------------------------------- fused kernel --------------------------------
def fused_window_attention_kernel(x_ref, c_ref, o_ref):
    """Whole WindowAttention forward for all (B*N, DIM) tokens in one step.

    x_ref : (BN, DIM)       input tokens in ORIGINAL order
    c_ref : (BN, SLAB_COLS) packed constant slab (see column layout above)
    o_ref : (BN, DIM)       output tokens in original order
    """
    x = x_ref[...]                                               # (BN, DIM) f32

    # to_qkv (bias-free linear) directly on original-order tokens.
    qkv = jnp.dot(x, c_ref[:, WQKV_LO:WQKV_HI],
                  preferred_element_type=jnp.float32)            # (BN, 3*INNER)

    # combined rel-pos/scale1/tri/left-mask bias, conjugated to original order.
    bias = c_ref[:, BIAS_LO:BIAS_HI]                             # (BN, BN)

    y = None
    for h in range(HEADS):                                       # static unroll
        qh = qkv[:, h * HEAD_DIM:(h + 1) * HEAD_DIM]                       # (BN, hd)
        kh = qkv[:, INNER + h * HEAD_DIM:INNER + (h + 1) * HEAD_DIM]       # (BN, hd)
        vh = qkv[:, 2 * INNER + h * HEAD_DIM:2 * INNER + (h + 1) * HEAD_DIM]

        # all batches & windows at once; entries outside each token's window
        # are killed by the -1e9 entries baked into `bias`.
        s = jax.lax.dot_general(qh, kh, (((1,), (1,)), ((), ())),
                                preferred_element_type=jnp.float32)
        s = s * QK_CONST + bias                                  # scale+scale1+masks

        # Softmax without the row-max subtraction: unmasked logits are bounded
        # small here and masked -1e9 logits underflow exp to exactly 0.
        # (Re-enable max-subtraction if |logit| could ever exceed ~80.)
        e = jnp.exp(s)
        p = e * pl.reciprocal(jnp.sum(e, axis=-1, keepdims=True), approx=True)

        oh = jnp.dot(p, vh, preferred_element_type=jnp.float32)  # (BN, hd)

        # to_out accumulated per head: concat_h(oh) @ W_out == sum_h oh @ W_out[h rows]
        contrib = jnp.dot(oh, c_ref[h * HEAD_DIM:(h + 1) * HEAD_DIM, WOUT_LO:WOUT_HI],
                          preferred_element_type=jnp.float32)
        y = contrib if y is None else y + contrib

    # Fused (window-merge + cyclic back shift) permutation Q, then output bias.
    # HIGHEST precision on this one tiny dot keeps the 0/1 permutation exact
    # (avoids a needless bf16 rounding of y); its cost is negligible.
    out = jnp.dot(c_ref[:, QPERM_LO:QPERM_HI], y,
                  precision=jax.lax.Precision.HIGHEST,
                  preferred_element_type=jnp.float32)
    o_ref[...] = out + c_ref[:, BOUT_LO:BOUT_HI]


def window_attention_forward(x, params):
    """x: (B, N, DIM) float32 -> (B, N, DIM) float32."""
    b, n, d = x.shape
    assert (b, n, d) == (B, N, DIM)
    x2d = x.reshape(b * n, d)                    # free reshape, no data movement

    vmem = pltpu.MemorySpace.VMEM
    out = pl.pallas_call(
        fused_window_attention_kernel,
        out_shape=jax.ShapeDtypeStruct((b * n, DIM), jnp.float32),
        in_specs=[pl.BlockSpec(memory_space=vmem),
                  pl.BlockSpec(memory_space=vmem)],
        out_specs=pl.BlockSpec(memory_space=vmem),
        cost_estimate=pl.CostEstimate(flops=_FLOPS,
                                      transcendentals=_TRANSCENDENTALS,
                                      bytes_accessed=_BYTES_ACCESSED),
        # NOTE: at real workload sizes, add a leading grid axis over independent
        # instances with dimension_semantics=("parallel", ...) so v7x can shard
        # across both TensorCores, and keep lane dims >= 128.
    )(x2d, params["slab"])
    return out.reshape(b, n, DIM)


# --------------------------- pure-JAX reference ------------------------------
def reference_forward(x, params):
    xs = jnp.roll(x, -DISPLACEMENT, axis=1) if SHIFTED else x
    b, n, d = xs.shape
    new_p = n // WINDOW
    qkv = (xs.reshape(b * n, d) @ params["w_qkv"]).reshape(b, n, 3 * INNER)
    q, k, v = jnp.split(qkv, 3, axis=-1)

    def rearr(t):
        return t.reshape(b, WINDOW, new_p, HEADS, HEAD_DIM).transpose(0, 3, 2, 1, 4)

    q, k, v = rearr(q), rearr(k), rearr(v)
    dots = jnp.einsum('bhpid,bhpjd->bhpij', q, k) * SCALE
    dots = dots + params["rel_bias"][None, None, None]
    if SCALE1:
        dots = dots / math.sqrt(HEAD_DIM)
    tm = params["tri_mask"][None, None]
    dots = dots * tm + NEG_MASK * (1.0 - tm)
    if SHIFTED:
        dots = dots + params["left_mask"][None, None, None]
    m = jnp.max(dots, axis=-1, keepdims=True)
    e = jnp.exp(dots - m)
    attn = e / jnp.sum(e, axis=-1, keepdims=True)
    out = jnp.einsum('bhpij,bhpjd->bhpid', attn, v)
    out = out.transpose(0, 2, 3, 1, 4).reshape(b * n, INNER)
    out = out @ params["w_out"] + params["b_out"][0]
    out = out.reshape(b, n, DIM)
    if SHIFTED:
        out = jnp.roll(out, DISPLACEMENT, axis=1)
    return out


# ------------------------------- param setup ---------------------------------
def make_params(key):
    k1, k2, k3, k4 = jax.random.split(key, 4)
    w_qkv = 0.1 * jax.random.normal(k1, (DIM, 3 * INNER), jnp.float32)
    w_out = 0.1 * jax.random.normal(k2, (INNER, DIM), jnp.float32)
    b_out = 0.1 * jax.random.normal(k3, (1, DIM), jnp.float32)
    pos_embedding = jax.random.normal(k4, (2 * WINDOW - 1,), jnp.float32)

    # relative_indices = get_relative_distances(ws) + ws - 1; bias = pos_emb[idx]
    idx = np.arange(WINDOW)
    rel_idx = idx[None, :] - idx[:, None] + WINDOW - 1            # (ws, ws)
    rel_bias = pos_embedding[jnp.asarray(rel_idx)]                # (ws, ws)

    # left_mask = create_mask(window_size, displacement, MASK)
    lm = np.zeros((WINDOW, WINDOW), np.float32)
    if MASK_FLAG:
        lm[-DISPLACEMENT:, :-DISPLACEMENT] = -np.inf
        lm[:-DISPLACEMENT, -DISPLACEMENT:] = -np.inf
    else:
        lm[-DISPLACEMENT * WINDOW:, :-DISPLACEMENT * WINDOW] = -np.inf
        lm[:-DISPLACEMENT * WINDOW, -DISPLACEMENT * WINDOW:] = -np.inf
    left_mask = jnp.asarray(lm)

    # mask_tri = tril(ones(win_len, win_len)); slice [:n*ws, :ws] per patch
    tril_full = np.tril(np.ones((WIN_LEN, WIN_LEN), np.float32))
    tri_np = tril_full[:NEW_P * WINDOW, :WINDOW].reshape(NEW_P, WINDOW, WINDOW)
    tri_mask = jnp.asarray(tri_np)

    # ------------------ fused-kernel constants (host precompute) -------------
    inv = (1.0 / math.sqrt(HEAD_DIM)) if SCALE1 else 1.0
    rel_np = np.asarray(rel_bias, dtype=np.float32)

    # combined additive per-patch bias: rel/sqrt(hd) + tri(-1e9) [+ left(-1e9)]
    bias4 = rel_np[None, :, :] * inv + np.where(tri_np > 0.5, 0.0, NEG_MASK)
    if SHIFTED:
        bias4 = bias4 + np.where(np.isfinite(lm), 0.0, NEG_MASK)[None, :, :]

    # (BN, BN) additive bias in WINDOW-ORDER rows: -1e9 everywhere except the
    # per-(batch, window) 4x4 diagonal blocks.
    bias_win = np.full((BN, BN), NEG_MASK, np.float32)
    for bb in range(B):
        for p in range(NEW_P):
            r0 = bb * N + p * WINDOW
            bias_win[r0:r0 + WINDOW, r0:r0 + WINDOW] = bias4[p]

    # permutation matrices (block-diagonal over batch):
    #  p_win : cyclic shift (-disp) + 'b (w p) (h d) -> b h p w d' row order
    #  p_back: cyclic back shift (+disp) of the merged output rows
    shift = DISPLACEMENT if SHIFTED else 0
    p_win = np.zeros((BN, BN), np.float32)
    p_back = np.zeros((BN, BN), np.float32)
    for bb in range(B):
        for r in range(N):
            p_idx, i_idx = divmod(r, WINDOW)
            t_shift = i_idx * NEW_P + p_idx           # token idx in shifted seq
            p_win[bb * N + r, bb * N + (t_shift + shift) % N] = 1.0
        for t in range(N):
            p_back[bb * N + t, bb * N + (t - shift) % N] = 1.0

    # Conjugate the bias into ORIGINAL token order and fuse the two row
    # permutations into a single epilogue permutation Q (exact 0/1 algebra):
    #   attention(P x) = P attention_with(P^T bias P)(x)
    #   out = p_back @ P @ y_orig = Q @ y_orig
    bias_orig = p_win.T @ bias_win @ p_win            # (BN, BN), exact
    q_perm = p_back @ p_win                           # (BN, BN), exact

    # Pack all constants into ONE lane-dense slab -> a single input DMA.
    slab = np.zeros((BN, SLAB_COLS), np.float32)
    slab[:, WQKV_LO:WQKV_HI] = np.asarray(w_qkv)
    slab[:, QPERM_LO:QPERM_HI] = q_perm
    slab[:, BIAS_LO:BIAS_HI] = bias_orig
    slab[:INNER, WOUT_LO:WOUT_HI] = np.asarray(w_out)
    slab[:, BOUT_LO:BOUT_HI] = np.broadcast_to(np.asarray(b_out), (BN, DIM))

    return {"w_qkv": w_qkv, "w_out": w_out, "b_out": b_out,
            "rel_bias": rel_bias, "left_mask": left_mask, "tri_mask": tri_mask,
            "slab": jnp.asarray(slab)}


# ----------------------------------- main ------------------------------------
if __name__ == "__main__":
    root = jax.random.PRNGKey(0)
    pkey, xkey = jax.random.split(root)
    params = make_params(pkey)
    x = jax.random.normal(xkey, (B, N, DIM), jnp.float32)

    out = jax.block_until_ready(window_attention_forward(x, params))
    ref = jax.block_until_ready(reference_forward(x, params))

    # Tolerance accounts for: default (single bf16-pass, f32-accumulate) MXU
    # precision in both kernel and reference (per perf review, no global
    # "highest" override) and the approximate EUP reciprocal in the kernel
    # softmax.  Structural errors (masks/permutations/bias) would show up as
    # O(0.1 - 1) deviations, far above this.
    np.testing.assert_allclose(np.asarray(out), np.asarray(ref),
                               rtol=5e-3, atol=5e-3)
    assert out.shape == (B, N, DIM)
    assert bool(jnp.all(jnp.isfinite(out)))
    print("KERNEL_OK")
</pallas_src>

<mosaic_0001>
module attributes {stable_mosaic.version = 11 : i64} {
  func.func @fused_window_attention_kernel(%arg0: memref<32x32xf32, #tpu.memory_space<vmem>>, %arg1: memref<32x256xf32, #tpu.memory_space<vmem>>, %arg2: memref<32x32xf32, #tpu.memory_space<vmem>>) attributes {dimension_semantics = [], scalar_prefetch = 0 : i64, scratch_operands = 0 : i64, tpu.core_type = #tpu.core_type<tc>} {
    %c0 = arith.constant 0 : index
    %c0_0 = arith.constant 0 : index
    %0 = vector.load %arg0[%c0, %c0_0] : memref<32x32xf32, #tpu.memory_space<vmem>>, vector<32x32xf32>
    %c0_1 = arith.constant 0 : index
    %c0_2 = arith.constant 0 : index
    %1 = vector.load %arg1[%c0_1, %c0_2] : memref<32x256xf32, #tpu.memory_space<vmem>>, vector<32x96xf32>
    %cst = arith.constant dense<0.000000e+00> : vector<32x96xf32>
    %2 = tpu.matmul %0, %1, %cst {dimension_numbers = #tpu.dot_dimension_numbers<[1], [0], [0], [1], [0, 0, 1, 1], [], []>} : vector<32x32xf32>, vector<32x96xf32>, vector<32x96xf32> -> vector<32x96xf32>
    %c0_3 = arith.constant 0 : index
    %c128 = arith.constant 128 : index
    %3 = vector.load %arg1[%c0_3, %c128] : memref<32x256xf32, #tpu.memory_space<vmem>>, vector<32x32xf32>
    %4 = vector.extract_strided_slice %2 {offsets = [0, 0], sizes = [32, 16], strides = [1, 1]} : vector<32x96xf32> to vector<32x16xf32>
    %5 = vector.extract_strided_slice %2 {offsets = [0, 32], sizes = [32, 16], strides = [1, 1]} : vector<32x96xf32> to vector<32x16xf32>
    %6 = vector.extract_strided_slice %2 {offsets = [0, 64], sizes = [32, 16], strides = [1, 1]} : vector<32x96xf32> to vector<32x16xf32>
    %cst_4 = arith.constant dense<0.000000e+00> : vector<32x32xf32>
    %7 = tpu.matmul %4, %5, %cst_4 {dimension_numbers = #tpu.dot_dimension_numbers<[1], [1], [0], [0], [0, 0, 1, 0], [], []>} : vector<32x16xf32>, vector<32x16xf32>, vector<32x32xf32> -> vector<32x32xf32>
    %cst_5 = arith.constant 6.250000e-02 : f32
    %8 = vector.broadcast %cst_5 : f32 to vector<32x32xf32>
    %9 = arith.mulf %7, %8 : vector<32x32xf32>
    %10 = arith.addf %9, %3 : vector<32x32xf32>
    %11 = math.exp %10 : vector<32x32xf32>
    %cst_6 = arith.constant dense<0.000000e+00> : vector<32xf32>
    %12 = vector.multi_reduction <add>, %11, %cst_6 [1] : vector<32x32xf32> to vector<32xf32>
    %13 = vector.shape_cast %12 : vector<32xf32> to vector<32x1xf32>
    %14 = tpu.reciprocal %13 {approx = true} : vector<32x1xf32> -> vector<32x1xf32>
    %15 = vector.broadcast %14 : vector<32x1xf32> to vector<32x32xf32>
    %16 = arith.mulf %11, %15 : vector<32x32xf32>
    %cst_7 = arith.constant dense<0.000000e+00> : vector<32x16xf32>
    %17 = tpu.matmul %16, %6, %cst_7 {dimension_numbers = #tpu.dot_dimension_numbers<[1], [0], [0], [1], [0, 0, 1, 1], [], []>} : vector<32x32xf32>, vector<32x16xf32>, vector<32x16xf32> -> vector<32x16xf32>
    %c0_8 = arith.constant 0 : index
    %c160 = arith.constant 160 : index
    %18 = vector.load %arg1[%c0_8, %c160] : memref<32x256xf32, #tpu.memory_space<vmem>>, vector<16x32xf32>
    %cst_9 = arith.constant dense<0.000000e+00> : vector<32x32xf32>
    %19 = tpu.matmul %17, %18, %cst_9 {dimension_numbers = #tpu.dot_dimension_numbers<[1], [0], [0], [1], [0, 0, 1, 1], [], []>} : vector<32x16xf32>, vector<16x32xf32>, vector<32x32xf32> -> vector<32x32xf32>
    %20 = vector.extract_strided_slice %2 {offsets = [0, 16], sizes = [32, 16], strides = [1, 1]} : vector<32x96xf32> to vector<32x16xf32>
    %21 = vector.extract_strided_slice %2 {offsets = [0, 48], sizes = [32, 16], strides = [1, 1]} : vector<32x96xf32> to vector<32x16xf32>
    %22 = vector.extract_strided_slice %2 {offsets = [0, 80], sizes = [32, 16], strides = [1, 1]} : vector<32x96xf32> to vector<32x16xf32>
    %cst_10 = arith.constant dense<0.000000e+00> : vector<32x32xf32>
    %23 = tpu.matmul %20, %21, %cst_10 {dimension_numbers = #tpu.dot_dimension_numbers<[1], [1], [0], [0], [0, 0, 1, 0], [], []>} : vector<32x16xf32>, vector<32x16xf32>, vector<32x32xf32> -> vector<32x32xf32>
    %cst_11 = arith.constant 6.250000e-02 : f32
    %24 = vector.broadcast %cst_11 : f32 to vector<32x32xf32>
    %25 = arith.mulf %23, %24 : vector<32x32xf32>
    %26 = arith.addf %25, %3 : vector<32x32xf32>
    %27 = math.exp %26 : vector<32x32xf32>
    %cst_12 = arith.constant dense<0.000000e+00> : vector<32xf32>
    %28 = vector.multi_reduction <add>, %27, %cst_12 [1] : vector<32x32xf32> to vector<32xf32>
    %29 = vector.shape_cast %28 : vector<32xf32> to vector<32x1xf32>
    %30 = tpu.reciprocal %29 {approx = true} : vector<32x1xf32> -> vector<32x1xf32>
    %31 = vector.broadcast %30 : vector<32x1xf32> to vector<32x32xf32>
    %32 = arith.mulf %27, %31 : vector<32x32xf32>
    %cst_13 = arith.constant dense<0.000000e+00> : vector<32x16xf32>
    %33 = tpu.matmul %32, %22, %cst_13 {dimension_numbers = #tpu.dot_dimension_numbers<[1], [0], [0], [1], [0, 0, 1, 1], [], []>} : vector<32x32xf32>, vector<32x16xf32>, vector<32x16xf32> -> vector<32x16xf32>
    %c16 = arith.constant 16 : index
    %c160_14 = arith.constant 160 : index
    %34 = vector.load %arg1[%c16, %c160_14] : memref<32x256xf32, #tpu.memory_space<vmem>>, vector<16x32xf32>
    %cst_15 = arith.constant dense<0.000000e+00> : vector<32x32xf32>
    %35 = tpu.matmul %33, %34, %cst_15 {dimension_numbers = #tpu.dot_dimension_numbers<[1], [0], [0], [1], [0, 0, 1, 1], [], []>} : vector<32x16xf32>, vector<16x32xf32>, vector<32x32xf32> -> vector<32x32xf32>
    %36 = arith.addf %19, %35 : vector<32x32xf32>
    %c0_16 = arith.constant 0 : index
    %c96 = arith.constant 96 : index
    %37 = vector.load %arg1[%c0_16, %c96] : memref<32x256xf32, #tpu.memory_space<vmem>>, vector<32x32xf32>
    %cst_17 = arith.constant dense<0.000000e+00> : vector<32x32xf32>
    %38 = tpu.matmul %37, %36, %cst_17 {dimension_numbers = #tpu.dot_dimension_numbers<[1], [0], [0], [1], [0, 0, 1, 1], [], []>, precision = #tpu.contract_precision<fp32>} : vector<32x32xf32>, vector<32x32xf32>, vector<32x32xf32> -> vector<32x32xf32>
    %c0_18 = arith.constant 0 : index
    %c192 = arith.constant 192 : index
    %39 = vector.load %arg1[%c0_18, %c192] : memref<32x256xf32, #tpu.memory_space<vmem>>, vector<32x32xf32>
    %40 = arith.addf %38, %39 : vector<32x32xf32>
    %c0_19 = arith.constant 0 : index
    %c0_20 = arith.constant 0 : index
    %41 = vector.load %arg2[%c0_19, %c0_20] : memref<32x32xf32, #tpu.memory_space<vmem>>, vector<32x32xf32>
    tpu.vector_store %arg2[%c0_19, %c0_20], %40 {strides = array<i32>} : memref<32x32xf32, #tpu.memory_space<vmem>>, vector<32x32xf32>,
    return
  }
}

</mosaic_0001>

<bundles_post_ra>
// kernel: tpu_custom_call.1
= control target key start
LH: loop header
LB: loop body
LE: loop exit
PB: predicated region body
PF: predicated region fallthrough
CT: control target
= control target key end

     0   :  { %7 = vsyncpa [#allocation3], 0  ;;  %s1219_s0 = inlined_call_operand.hbm [shape: f32[32,32], index: 0, kind: input, shape index: {}]   ;;  %s1220_s1 = inlined_call_operand.hbm [shape: f32[32,256], index: 1, kind: input, shape index: {}]   ;;  %s1221_s2 = inlined_call_operand.hbm [shape: f32[32,32], index: 2, kind: output, shape index: {}]  }
   0x1   :  { %8 = vsyncpa [#allocation6], 0 }
   0x2   :  { %9 = vsyncpa [#allocation4], 0  ;;  %s14_s11 = sshll.u32 %s1219_s0, 4  ;;  %s1024_s12 = smov [#allocation2]   ;;  %s15_s11 = int_to_ptr.hbm [resolvable:$true] %s14_s11 }
   0x3   :  { %s16_s13 = sshll.u32 %s1024_s12, 4  ;;  %s27_s16 = sshll.u32 %s1220_s1, 4  ;;  %s17_s13 = int_to_ptr.vmem [resolvable:$true] %s16_s13  ;;  %s28_s16 = int_to_ptr.hbm [resolvable:$true] %s27_s16 }
   0x4   :  { %s1025_s17 = smov 128   ;;  %s1026_s18 = smov 8  }
   0x5   :  { %22 = dma.hbm_to_vmem [thread:$0]  %s15_s11, 512, %s17_s13, [#allocation3], %s1025_s17, %s1025_s17, %s1026_s18  }
   0x6   :  { %s1027_s19 = smov [#allocation5]   ;;  %s1028_s21 = smov 256  }
   0x7   :  { %s29_s20 = sshll.u32 %s1027_s19, 4  ;;  %s1029_s0 = smov 16   ;;  %s30_s20 = int_to_ptr.vmem [resolvable:$true] %s29_s20 }
   0x8   :  { %35 = dma.hbm_to_vmem [thread:$0]  %s28_s16, 1024, %s30_s20, [#allocation6], %s1028_s21, %s1028_s21, %s1029_s0  }
   0x9   :  { %1018 = dma.done.wait [#allocation3], 512  }
   0xa   :  { %1019 = vsyncadd [#allocation3], 4294966784 }
   0xb   :  { %1020 = dma.done.wait [#allocation6], 1024  }
   0xc   :  { %1021 = vsyncadd [#allocation6], 4294966272  ;;  %v1061_v0 = vld [vmem:[#allocation5 + $0x30] sm:$0xff]  ;;  %v1063_v1 = vld [vmem:[#allocation5 + $0x20] sm:$0xff]  ;;  %vm52_vm0 = vcmask 261120   ;;  %s1030_s1 = smov 96  }
   0xd   :  { %867 = vmatpush.msra.mxu2 %v1061_v0  ;;  %77 = vmatpush.msra.mxu0 %v1061_v0  ;;  %v1067_v2 = vld [vmem:[#allocation5 + $0x10] sm:$0xff]  ;;  %v1071_v3 = vld [vmem:[#allocation5] sm:$0xff]  ;;  %v47_v6 = vld [vmem:[#allocation2 + $0x18] sm:$0xff]  ;;  %s1031_s22 = smov 80   ;;  %s1032_s23 = smov 112   ;;  %vm110_vm1 = vcmask 130048  }
   0xe   :  { %v46_v4 = vld [vmem:[#allocation2 + $0x10] sm:$0xff]  ;;  %v44_v5 = vld [vmem:[#allocation2] sm:$0xff]  ;;  %v45_v7 = vld [vmem:[#allocation2 + $0x8] sm:$0xff]  ;;  %s1033_s24 = smov 64   ;;  %s1034_s25 = smov 48  }
   0xf   :  { %868 = vmatpush.msra.mxu2 %v1063_v1  ;;  %78 = vmatpush.msra.mxu0 %v1063_v1  ;;  %v1117_v38 = vld [vmem:[#allocation5 + $0x8] sm:$0xff]  ;;  %v1121_v47 = vld [vmem:[#allocation5 + $0x18] sm:$0xff]  ;;  %s1035_s26 = smov 32   ;;  %s1036_s27 = smov [#allocation7]  }
  0x10   :  { %v1126_v59 = vld [vmem:[#allocation5 + $0x28] sm:$0xff]  ;;  %s815_s28 = sshll.u32 %s1036_s27, 4  ;;  %s817_s3 = sshll.u32 %s1221_s2, 4  ;;  %s816_s28 = int_to_ptr.vmem [resolvable:$true] %s815_s28  ;;  %s818_s3 = int_to_ptr.hbm [resolvable:$true] %s817_s3 }
  0x11   :  { %869 = vmatpush.msra.mxu2 %v1067_v2  ;;  %79 = vmatpush.msra.mxu0 %v1067_v2 }
  0x13   :  { %870 = vmatpush.msra.mxu2 %v1071_v3  ;;  %80 = vmatpush.msra.mxu0 %v1071_v3 }
  0x14   :  { %833 = vmatmul.msk.f32.vlgmr.msra.gmra.mxu2 %vm52_vm0, %v46_v4  ;;  %831 = vmatmul.msk.f32.vlgmr.msra.gmra.mxu0 %vm52_vm0, %v44_v5 }
  0x1c   :  { %834 = vmatmul.msk.f32.gmra.mxu2 %vm52_vm0, %v47_v6  ;;  %832 = vmatmul.msk.f32.gmra.mxu0 %vm52_vm0, %v45_v7 }
  0x91   :  { %v82_v9 = vpop.f32.mrf.mxu0 }
  0x97   :  { %v1081_v8 = vpop.f32.mrf.mxu2 }
  0x98   :  { %106 = vrot.lane.b32.xlu2 %v1081_v8, %s1030_s1 }
  0x99   :  { %v85_v11 = vpop.f32.mrf.mxu0 }
  0x9a   :  { %v894_v13 = vpack.i.bf16 %v82_v9, %v85_v11 }
  0x9f   :  { %v1085_v10 = vpop.f32.mrf.mxu2 }
  0xa0   :  { %108 = vrot.lane.b32.xlu1 %v1085_v10, %s1030_s1  ;;  %261 = vrot.lane.b32.xlu0 %v1085_v10, %s1031_s22  ;;  %v884_v12 = vpack.i.bf16 %v1081_v8, %v1085_v10 }
  0xa1   :  { %255 = vrot.lane.b32.xlu2 %v82_v9, %s1031_s22 }
  0xa8   :  { %259 = vrot.lane.b32.xlu0 %v1081_v8, %s1031_s22  ;;  %257 = vrot.lane.b32.xlu1 %v85_v11, %s1031_s22 }
  0xa9   :  { %102 = vrot.lane.b32.xlu2 %v82_v9, %s1030_s1 }
  0xb0   :  { %104 = vrot.lane.b32.xlu0 %v85_v11, %s1030_s1  ;;  %247 = vrot.lane.b32.xlu1 %v82_v9, %s1032_s23 }
  0xb1   :  { %253 = vrot.lane.b32.xlu2 %v1085_v10, %s1032_s23 }
  0xb8   :  { %249 = vrot.lane.b32.xlu0 %v85_v11, %s1032_s23  ;;  %251 = vrot.lane.b32.xlu1 %v1081_v8, %s1032_s23 }
  0xb9   :  { %885 = vrot.lane.b32.xlu2 %v884_v12, %s1033_s24 }
  0xc1   :  { %890 = vrot.lane.b32.xlu2 %v884_v12, %s1034_s25  ;;  %v1132_v12 = vld [vmem:[#allocation5 + $0x38] sm:$0xff] }
  0xc9   :  { %895 = vrot.lane.b32.xlu2 %v894_v13, %s1033_s24 }
  0xd1   :  { %900 = vrot.lane.b32.xlu2 %v894_v13, %s1034_s25 }
  0xf2   :  { %v107_v14 = vpop.permute.xlu2 %106 }
  0xfb   :  { %v256_v15 = vpop.permute.xlu2 %255 }
 0x103   :  { %v103_v16 = vpop.permute.xlu2 %102 }
 0x10b   :  { %v254_v17 = vpop.permute.xlu2 %253 }
 0x112   :  { %v109_v18 = vpop.permute.xlu1 %108  ;;  %v262_v19 = vpop.permute.xlu0 %261 }
 0x113   :  { %v886_v20 = vpop.permute.xlu2 %885  ;;  %835 = vmatpush.xpose.msk.msra.mxu1 %vm110_vm1, %v109_v18  ;;  %847 = vmatpush.xpose.msk.msra.mxu3 %vm110_vm1, %v262_v19 }
 0x114   :  { %v887_v21 = vunpack.i.l.bf16 %v886_v20  ;;  %v888_v22 = vunpack.i.h.bf16 %v886_v20 }
 0x116   :  { %228 = vmatpush.msrb.mxu2 %v887_v21 }
 0x117   :  { %836 = vmatpush.xpose.msk.msra.mxu1 %vm110_vm1, %v107_v14 }
 0x118   :  { %229 = vmatpush.msrb.mxu2 %v888_v22 }
 0x11a   :  { %v260_v23 = vpop.permute.xlu0 %259  ;;  %v258_v25 = vpop.permute.xlu1 %257 }
 0x11b   :  { %v891_v24 = vpop.permute.xlu2 %890  ;;  %848 = vmatpush.xpose.msk.msra.mxu3 %vm110_vm1, %v260_v23 }
 0x11c   :  { %v892_v26 = vunpack.i.l.bf16 %v891_v24  ;;  %v893_v27 = vunpack.i.h.bf16 %v891_v24 }
 0x11e   :  { %380 = vmatpush.msrb.mxu0 %v892_v26 }
 0x11f   :  { %849 = vmatpush.xpose.msk.msra.mxu3 %vm110_vm1, %v258_v25 }
 0x120   :  { %381 = vmatpush.msrb.mxu0 %v893_v27 }
 0x122   :  { %v105_v28 = vpop.permute.xlu0 %104  ;;  %v248_v31 = vpop.permute.xlu1 %247 }
 0x123   :  { %v896_v29 = vpop.permute.xlu2 %895  ;;  %837 = vmatpush.xpose.msk.msra.mxu1 %vm110_vm1, %v105_v28  ;;  %850 = vmatpush.xpose.msk.msra.mxu3 %vm110_vm1, %v256_v15 }
 0x124   :  { %v897_v30 = vunpack.i.l.bf16 %v896_v29  ;;  %v898_v32 = vunpack.i.h.bf16 %v896_v29 }
 0x126   :  { %230 = vmatpush.msrb.mxu2 %v897_v30  ;;  %851 = vmatmul.msk.f32.vlgmr.msra.gmra.mxu3 %vm110_vm1, %v248_v31  ;;  %v904_v30 = vpack.i.bf16 %v1126_v59, %v1132_v12  ;;  %v909_v31 = vpack.i.bf16 %v1117_v38, %v1121_v47 }
 0x127   :  { %838 = vmatpush.xpose.msk.msra.mxu1 %vm110_vm1, %v103_v16 }
 0x128   :  { %231 = vmatpush.msrb.mxu2 %v898_v32 }
 0x12a   :  { %839 = vmatmul.msk.f32.vlgmr.msra.gmra.mxu1 %vm110_vm1, %v82_v9  ;;  %v250_v35 = vpop.permute.xlu0 %249  ;;  %v252_v37 = vpop.permute.xlu1 %251 }
 0x12b   :  { %v901_v33 = vpop.permute.xlu2 %900 }
 0x12c   :  { %v902_v34 = vunpack.i.l.bf16 %v901_v33  ;;  %v903_v36 = vunpack.i.h.bf16 %v901_v33 }
 0x12e   :  { %382 = vmatpush.msrb.mxu0 %v902_v34  ;;  %852 = vmatmul.msk.f32.gmra.mxu3 %vm110_vm1, %v250_v35 }
 0x130   :  { %383 = vmatpush.msrb.mxu0 %v903_v36 }
 0x132   :  { %840 = vmatmul.msk.f32.gmra.mxu1 %vm110_vm1, %v85_v11 }
 0x136   :  { %853 = vmatmul.msk.f32.gmra.mxu3 %vm110_vm1, %v252_v37 }
 0x13a   :  { %841 = vmatmul.msk.f32.gmra.mxu1 %vm110_vm1, %v1081_v8 }
 0x13e   :  { %854 = vmatmul.msk.f32.gmra.mxu3 %vm110_vm1, %v254_v17 }
 0x142   :  { %842 = vmatmul.msk.f32.gmra.mxu1 %vm110_vm1, %v1085_v10 }
 0x1a7   :  { %v144_v39 = vpop.f32.mrf.mxu1 }
 0x1a8   :  { %v156_v40 = vmul.f32 0.0625, %v144_v39 }
 0x1a9   :  { %v296_v41 = vpop.f32.mrf.mxu3 }
 0x1aa   :  { %v160_v42 = vadd.f32 %v156_v40, %v1117_v38  ;;  %v308_v43 = vmul.f32 0.0625, %v296_v41 }
 0x1ac   :  { %v164_v44 = vmul.f32 1.442695, %v160_v42  ;;  %v312_v45 = vadd.f32 %v308_v43, %v1117_v38 }
 0x1ae   :  { %914 = vpow2.f32 %v164_v44  ;;  %v316_v46 = vmul.f32 1.442695, %v312_v45 }
 0x1af   :  { %v147_v48 = vpop.f32.mrf.mxu1 }
 0x1b0   :  { %916 = vpow2.f32 %v316_v46  ;;  %v157_v49 = vmul.f32 0.0625, %v147_v48 }
 0x1b1   :  { %v299_v50 = vpop.f32.mrf.mxu3 }
 0x1b2   :  { %v161_v51 = vadd.f32 %v157_v49, %v1121_v47  ;;  %v309_v52 = vmul.f32 0.0625, %v299_v50 }
 0x1b4   :  { %v915_v53 = vpop.eup %914  ;;  %v166_v54 = vmul.f32 1.442695, %v161_v51  ;;  %v313_v55 = vadd.f32 %v309_v52, %v1121_v47 }
 0x1b5   :  { %v172_v56 = vsel %vm52_vm0, %v915_v53, 0.0 }
 0x1b6   :  { %v917_v57 = vpop.eup %916  ;;  %918 = vpow2.f32 %v166_v54  ;;  %v318_v58 = vmul.f32 1.442695, %v313_v55  ;;  %173 = vadd.xlane.f32.xlu0 %v172_v56 }
 0x1b7   :  { %v150_v60 = vpop.f32.mrf.mxu1  ;;  %v324_v61 = vsel %vm52_vm0, %v917_v57, 0.0 }
 0x1b8   :  { %920 = vpow2.f32 %v318_v58  ;;  %v158_v62 = vmul.f32 0.0625, %v150_v60  ;;  %325 = vadd.xlane.f32.xlu1 %v324_v61 }
 0x1b9   :  { %v302_v63 = vpop.f32.mrf.mxu3 }
 0x1ba   :  { %v162_v4 = vadd.f32 %v158_v62, %v1126_v59  ;;  %v310_v5 = vmul.f32 0.0625, %v302_v63 }
 0x1bc   :  { %v919_v6 = vpop.eup %918  ;;  %v168_v7 = vmul.f32 1.442695, %v162_v4  ;;  %v314_v8 = vadd.f32 %v310_v5, %v1126_v59 }
 0x1bd   :  { %v175_v9 = vsel %vm52_vm0, %v919_v6, 0.0 }
 0x1be   :  { %v921_v10 = vpop.eup %920  ;;  %922 = vpow2.f32 %v168_v7  ;;  %v320_v11 = vmul.f32 1.442695, %v314_v8  ;;  %176 = vadd.xlane.f32.xlu2 %v175_v9 }
 0x1bf   :  { %v153_v13 = vpop.f32.mrf.mxu1  ;;  %v327_v14 = vsel %vm52_vm0, %v921_v10, 0.0 }
 0x1c0   :  { %924 = vpow2.f32 %v320_v11  ;;  %v159_v15 = vmul.f32 0.0625, %v153_v13  ;;  %328 = vadd.xlane.f32.xlu0 %v327_v14 }
 0x1c1   :  { %v305_v16 = vpop.f32.mrf.mxu3 }
 0x1c2   :  { %v163_v17 = vadd.f32 %v159_v15, %v1132_v12  ;;  %v311_v18 = vmul.f32 0.0625, %v305_v16 }
 0x1c4   :  { %v923_v19 = vpop.eup %922  ;;  %v170_v20 = vmul.f32 1.442695, %v163_v17  ;;  %v315_v21 = vadd.f32 %v311_v18, %v1132_v12 }
 0x1c5   :  { %v178_v22 = vsel %vm52_vm0, %v923_v19, 0.0 }
 0x1c6   :  { %v925_v23 = vpop.eup %924  ;;  %926 = vpow2.f32 %v170_v20  ;;  %v322_v24 = vmul.f32 1.442695, %v315_v21  ;;  %179 = vadd.xlane.f32.xlu1 %v178_v22 }
 0x1c7   :  { %v330_v25 = vsel %vm52_vm0, %v925_v23, 0.0 }
 0x1c8   :  { %928 = vpow2.f32 %v322_v24  ;;  %331 = vadd.xlane.f32.xlu0 %v330_v25 }
 0x1cc   :  { %v927_v26 = vpop.eup %926 }
 0x1cd   :  { %v181_v27 = vsel %vm52_vm0, %v927_v26, 0.0 }
 0x1ce   :  { %v929_v28 = vpop.eup %928  ;;  %182 = vadd.xlane.f32.xlu1 %v181_v27 }
 0x1cf   :  { %v333_v29 = vsel %vm52_vm0, %v929_v28, 0.0 }
 0x1d0   :  { %334 = vadd.xlane.f32.xlu0 %v333_v29 }
 0x1d6   :  { %499 = vrot.lane.b32.xlu2 %v1071_v3, %s1035_s26 }
 0x1de   :  { %511 = vrot.lane.b32.xlu2 %v1121_v47, %s1033_s24 }
 0x1e4   :  { %910 = vrot.lane.b32.xlu0 %v909_v31, %s1030_s1 }
 0x1e7   :  { %905 = vrot.lane.b32.xlu1 %v904_v30, %s1030_s1 }
 0x1ec   :  { %503 = vrot.lane.b32.xlu0 %v1063_v1, %s1035_s26 }
 0x1ef   :  { %501 = vrot.lane.b32.xlu1 %v1067_v2, %s1035_s26 }
 0x1f4   :  { %509 = vrot.lane.b32.xlu0 %v1117_v38, %s1033_s24 }
 0x1f7   :  { %505 = vrot.lane.b32.xlu1 %v1061_v0, %s1035_s26 }
 0x1fc   :  { %515 = vrot.lane.b32.xlu0 %v1132_v12, %s1033_s24 }
 0x1ff   :  { %513 = vrot.lane.b32.xlu1 %v1126_v59, %s1033_s24 }
 0x229   :  { %v174_v32 = vpop.xlane.xlu0 %173 }
 0x22a   :  { %930 = vrcp.f32 %v174_v32 }
 0x22b   :  { %v326_v33 = vpop.xlane.xlu1 %325 }
 0x22c   :  { %932 = vrcp.f32 %v326_v33 }
 0x230   :  { %v931_v34 = vpop.eup %930 }
 0x231   :  { %v177_v35 = vpop.xlane.xlu2 %176  ;;  %v188_v36 = vmul.f32 %v931_v34, %v915_v53 }
 0x232   :  { %v933_v37 = vpop.eup %932  ;;  %934 = vrcp.f32 %v177_v35 }
 0x233   :  { %843 = vmatmul.msk.f32.vlgmr.msrb.gmra.mxu2 %vm52_vm0, %v188_v36  ;;  %v329_v39 = vpop.xlane.xlu0 %328  ;;  %v340_v40 = vmul.f32 %v933_v37, %v917_v57 }
 0x234   :  { %936 = vrcp.f32 %v329_v39 }
 0x235   :  { %855 = vmatmul.msk.f32.vlgmr.msrb.gmra.mxu0 %vm52_vm0, %v340_v40 }
 0x238   :  { %v935_v41 = vpop.eup %934 }
 0x239   :  { %v180_v42 = vpop.xlane.xlu1 %179  ;;  %v189_v43 = vmul.f32 %v935_v41, %v919_v6 }
 0x23a   :  { %v937_v44 = vpop.eup %936  ;;  %938 = vrcp.f32 %v180_v42 }
 0x23b   :  { %844 = vmatmul.msk.f32.gmra.mxu2 %vm52_vm0, %v189_v43  ;;  %v332_v45 = vpop.xlane.xlu0 %331  ;;  %v341_v46 = vmul.f32 %v937_v44, %v921_v10  ;;  %v500_v10 = vpop.permute.xlu2 %499 }
 0x23c   :  { %940 = vrcp.f32 %v332_v45  ;;  %v521_v12 = vsel %vm52_vm0, %v500_v10, 0 }
 0x23d   :  { %856 = vmatmul.msk.f32.gmra.mxu0 %vm52_vm0, %v341_v46  ;;  %v1176_v15 = vand.u32 4294901760, %v521_v12 }
 0x23f   :  { %v550_v20 = vsub.f32 %v521_v12, %v1176_v15 }
 0x240   :  { %v939_v48 = vpop.eup %938 }
 0x241   :  { %v183_v49 = vpop.xlane.xlu1 %182  ;;  %v190_v50 = vmul.f32 %v939_v48, %v923_v19 }
 0x242   :  { %v941_v51 = vpop.eup %940  ;;  %942 = vrcp.f32 %v183_v49 }
 0x243   :  { %v335_v52 = vpop.xlane.xlu0 %334  ;;  %845 = vmatmul.msk.f32.gmra.mxu2 %vm52_vm0, %v190_v50  ;;  %v342_v53 = vmul.f32 %v941_v51, %v925_v23  ;;  %v512_v12 = vpop.permute.xlu2 %511 }
 0x244   :  { %944 = vrcp.f32 %v335_v52 }
 0x245   :  { %857 = vmatmul.msk.f32.gmra.mxu0 %vm52_vm0, %v342_v53 }
 0x248   :  { %v943_v54 = vpop.eup %942 }
 0x249   :  { %v191_v55 = vmul.f32 %v943_v54, %v927_v26 }
 0x24a   :  { %v945_v56 = vpop.eup %944 }
 0x24b   :  { %846 = vmatmul.msk.f32.gmra.mxu2 %vm52_vm0, %v191_v55  ;;  %v343_v57 = vmul.f32 %v945_v56, %v929_v28  ;;  %v551_v28 = vand.u32 4294901760, %v550_v20 }
 0x24d   :  { %858 = vmatmul.msk.f32.gmra.mxu0 %vm52_vm0, %v343_v57  ;;  %v552_v37 = vsub.f32 %v550_v20, %v551_v28 }
 0x24f   :  { %v553_v45 = vand.u32 4294901760, %v552_v37 }
 0x256   :  { %v911_v1 = vpop.permute.xlu0 %910 }
 0x257   :  { %v912_v3 = vunpack.i.l.bf16 %v911_v1  ;;  %v913_v0 = vunpack.i.h.bf16 %v911_v1 }
 0x259   :  { %v906_v58 = vpop.permute.xlu1 %905  ;;  %480 = vmatpush.msrb.mxu1 %v912_v3 }
 0x25a   :  { %v908_v2 = vunpack.i.h.bf16 %v906_v58  ;;  %v907_v60 = vunpack.i.l.bf16 %v906_v58 }
 0x25b   :  { %481 = vmatpush.msrb.mxu1 %v913_v0 }
 0x25c   :  { %431 = vmatpush.msra.mxu2 %v907_v60 }
 0x25e   :  { %432 = vmatpush.msra.mxu2 %v908_v2  ;;  %v504_v32 = vpop.permute.xlu0 %503 }
 0x25f   :  { %v525_v40 = vsel %vm52_vm0, %v504_v32, 0 }
 0x260   :  { %v565_v46 = vand.u32 4294901760, %v525_v40 }
 0x261   :  { %v502_v17 = vpop.permute.xlu1 %501 }
 0x262   :  { %v523_v22 = vsel %vm52_vm0, %v502_v17, 0  ;;  %v566_v54 = vsub.f32 %v525_v40, %v565_v46 }
 0x263   :  { %v1187_v29 = vand.u32 4294901760, %v523_v22 }
 0x264   :  { %v567_v1 = vand.u32 4294901760, %v566_v54 }
 0x265   :  { %v558_v36 = vsub.f32 %v523_v22, %v1187_v29 }
 0x266   :  { %v568_v0 = vsub.f32 %v566_v54, %v567_v1 }
 0x267   :  { %v559_v48 = vand.u32 4294901760, %v558_v36 }
 0x269   :  { %v506_v51 = vpop.permute.xlu1 %505  ;;  %v560_v55 = vsub.f32 %v558_v36, %v559_v48 }
 0x26a   :  { %v527_v57 = vsel %vm52_vm0, %v506_v51, 0 }
 0x26b   :  { %v561_v2 = vand.u32 4294901760, %v560_v55  ;;  %v573_v60 = vand.u32 4294901760, %v527_v57 }
 0x26d   :  { %v574_v3 = vsub.f32 %v527_v57, %v573_v60 }
 0x2b2   :  { %v385_v38 = vpop.f32.mrf.mxu0 }
 0x2b3   :  { %859 = vmatmul.msk.f32.vlgmr.msra.gmra.mxu2 %vm110_vm1, %v385_v38  ;;  %v569_v38 = vand.u32 4294901760, %v568_v0 }
 0x2b6   :  { %v233_v47 = vpop.f32.mrf.mxu2 }
 0x2b7   :  { %863 = vmatmul.msk.f32.vlgmr.msrb.gmra.mxu1 %vm110_vm1, %v233_v47  ;;  %v575_v47 = vand.u32 4294901760, %v574_v3 }
 0x2ba   :  { %v388_v59 = vpop.f32.mrf.mxu0 }
 0x2bb   :  { %860 = vmatmul.msk.f32.gmra.mxu2 %vm110_vm1, %v388_v59  ;;  %v576_v59 = vsub.f32 %v574_v3, %v575_v47 }
 0x2be   :  { %v236_v61 = vpop.f32.mrf.mxu2 }
 0x2bf   :  { %864 = vmatmul.msk.f32.gmra.mxu1 %vm110_vm1, %v236_v61  ;;  %v577_v61 = vand.u32 4294901760, %v576_v59 }
 0x2c2   :  { %v391_v62 = vpop.f32.mrf.mxu0 }
 0x2c3   :  { %861 = vmatmul.msk.f32.gmra.mxu2 %vm110_vm1, %v391_v62 }
 0x2c6   :  { %v239_v63 = vpop.f32.mrf.mxu2 }
 0x2c7   :  { %865 = vmatmul.msk.f32.gmra.mxu1 %vm110_vm1, %v239_v63 }
 0x2ca   :  { %v394_v4 = vpop.f32.mrf.mxu0 }
 0x2cb   :  { %862 = vmatmul.msk.f32.gmra.mxu2 %vm110_vm1, %v394_v4 }
 0x2ce   :  { %v242_v5 = vpop.f32.mrf.mxu2 }
 0x2cf   :  { %866 = vmatmul.msk.f32.gmra.mxu1 %vm110_vm1, %v242_v5 }
 0x334   :  { %v483_v6 = vpop.f32.mrf.mxu1 }
 0x336   :  { %v434_v7 = vpop.f32.mrf.mxu2 }
 0x337   :  { %v484_v18 = vadd.f32 %v483_v6, %v434_v7  ;;  %v510_v6 = vpop.permute.xlu0 %509 }
 0x339   :  { %v1184_v25 = vand.u32 4294901760, %v484_v18 }
 0x33b   :  { %v613_v33 = vsub.f32 %v484_v18, %v1184_v25 }
 0x33c   :  { %v486_v8 = vpop.f32.mrf.mxu1 }
 0x33d   :  { %v614_v44 = vand.u32 4294901760, %v613_v33 }
 0x33e   :  { %v437_v9 = vpop.f32.mrf.mxu2 }
 0x33f   :  { %v487_v16 = vadd.f32 %v486_v8, %v437_v9  ;;  %v615_v53 = vsub.f32 %v613_v33, %v614_v44 }
 0x341   :  { %v1181_v21 = vand.u32 4294901760, %v487_v16  ;;  %v616_v58 = vand.u32 4294901760, %v615_v53 }
 0x343   :  { %v607_v30 = vsub.f32 %v487_v16, %v1181_v21 }
 0x344   :  { %v489_v11 = vpop.f32.mrf.mxu1 }
 0x345   :  { %v608_v41 = vand.u32 4294901760, %v607_v30 }
 0x346   :  { %v440_v13 = vpop.f32.mrf.mxu2 }
 0x347   :  { %v490_v14 = vadd.f32 %v489_v11, %v440_v13  ;;  %v609_v50 = vsub.f32 %v607_v30, %v608_v41 }
 0x349   :  { %v1178_v19 = vand.u32 4294901760, %v490_v14  ;;  %v610_v56 = vand.u32 4294901760, %v609_v50 }
 0x34b   :  { %v601_v26 = vsub.f32 %v490_v14, %v1178_v19 }
 0x34c   :  { %v492_v23 = vpop.f32.mrf.mxu1 }
 0x34d   :  { %v602_v35 = vand.u32 4294901760, %v601_v26 }
 0x34e   :  { %v443_v24 = vpop.f32.mrf.mxu2 }
 0x34f   :  { %v493_v27 = vadd.f32 %v492_v23, %v443_v24  ;;  %v603_v43 = vsub.f32 %v601_v26, %v602_v35 }
 0x351   :  { %v541_v31 = vand.u32 4294901760, %v493_v27  ;;  %v604_v52 = vand.u32 4294901760, %v603_v43 }
 0x353   :  { %v595_v34 = vsub.f32 %v493_v27, %v541_v31  ;;  %542 = vmatpush.msrb.mxu3 %v541_v31  ;;  %693 = vmatpush.msra.mxu1 %v541_v31 }
 0x355   :  { %v596_v39 = vand.u32 4294901760, %v595_v34  ;;  %544 = vmatpush.msrb.mxu3 %v1178_v19  ;;  %649 = vmatpush.msrb.mxu2 %v595_v34 }
 0x356   :  { %695 = vmatpush.msra.mxu1 %v1178_v19 }
 0x357   :  { %v597_v42 = vsub.f32 %v595_v34, %v596_v39  ;;  %546 = vmatpush.msrb.mxu3 %v1181_v21  ;;  %652 = vmatpush.msrb.mxu2 %v601_v26 }
 0x358   :  { %697 = vmatpush.msra.mxu1 %v1181_v21 }
 0x359   :  { %548 = vmatpush.msrb.mxu3 %v1184_v25  ;;  %655 = vmatpush.msrb.mxu2 %v607_v30  ;;  %v598_v49 = vand.u32 4294901760, %v597_v42 }
 0x35a   :  { %699 = vmatpush.msra.mxu1 %v1184_v25  ;;  %554 = vmatmul.f32.vlgmr.msrb.gmra.mxu3 %v553_v45 }
 0x35b   :  { %740 = vmatpush.msra.mxu3 %v596_v39  ;;  %599 = vmatpush.msra.mxu0 %v598_v49 }
 0x35c   :  { %658 = vmatpush.msrb.mxu2 %v613_v33  ;;  %703 = vmatmul.f32.vlgmr.msra.gmra.mxu1 %v551_v28 }
 0x35d   :  { %744 = vmatpush.msra.mxu3 %v602_v35  ;;  %605 = vmatpush.msra.mxu0 %v604_v52 }
 0x35e   :  { %661 = vmatmul.f32.vlgmr.msrb.gmra.mxu2 %v550_v20 }
 0x35f   :  { %748 = vmatpush.msra.mxu3 %v608_v41  ;;  %611 = vmatpush.msra.mxu0 %v610_v56 }
 0x361   :  { %752 = vmatpush.msra.mxu3 %v614_v44  ;;  %617 = vmatpush.msra.mxu0 %v616_v58 }
 0x362   :  { %562 = vmatmul.f32.gmra.mxu3 %v561_v2  ;;  %619 = vmatmul.f32.vlgmr.msra.gmra.mxu0 %v1176_v15 }
 0x363   :  { %783 = vmatpush.msrb.mxu0 %v541_v31  ;;  %v516_v31 = vpop.permute.xlu0 %515 }
 0x364   :  { %709 = vmatmul.f32.gmra.mxu1 %v559_v48 }
 0x365   :  { %785 = vmatpush.msrb.mxu0 %v1178_v19 }
 0x366   :  { %666 = vmatmul.f32.gmra.mxu2 %v558_v36 }
 0x367   :  { %787 = vmatpush.msrb.mxu0 %v1181_v21  ;;  %v514_v21 = vpop.permute.xlu1 %513 }
 0x369   :  { %789 = vmatpush.msrb.mxu0 %v1184_v25 }
 0x36a   :  { %570 = vmatmul.f32.gmra.mxu3 %v569_v38  ;;  %623 = vmatmul.f32.gmra.mxu0 %v1187_v29 }
 0x36c   :  { %715 = vmatmul.f32.gmra.mxu1 %v567_v1 }
 0x36e   :  { %671 = vmatmul.f32.gmra.mxu2 %v566_v54 }
 0x372   :  { %578 = vmatmul.f32.gmra.mxu3 %v577_v61  ;;  %627 = vmatmul.f32.gmra.mxu0 %v565_v46 }
 0x374   :  { %721 = vmatmul.f32.gmra.mxu1 %v575_v47 }
 0x376   :  { %676 = vmatmul.f32.gmra.mxu2 %v574_v3 }
 0x37a   :  { %631 = vmatmul.f32.gmra.mxu0 %v573_v60  ;;  %754 = vmatmul.f32.vlgmr.msra.gmra.mxu3 %v1176_v15 }
 0x382   :  { %758 = vmatmul.f32.gmra.mxu3 %v1187_v29  ;;  %791 = vmatmul.f32.vlgmr.msrb.gmra.mxu0 %v1176_v15 }
 0x38a   :  { %762 = vmatmul.f32.gmra.mxu3 %v565_v46  ;;  %795 = vmatmul.f32.gmra.mxu0 %v1187_v29 }
 0x392   :  { %766 = vmatmul.f32.gmra.mxu3 %v573_v60  ;;  %799 = vmatmul.f32.gmra.mxu0 %v565_v46 }
 0x39a   :  { %803 = vmatmul.f32.gmra.mxu0 %v573_v60 }
 0x3d9   :  { %v704_v13 = vpop.f32.mrf.mxu1 }
 0x3dd   :  { %v555_v62 = vpop.f32.mrf.mxu3 }
 0x3de   :  { %v556_v9 = vadd.f32 %v555_v62, %v510_v6 }
 0x3df   :  { %v620_v63 = vpop.f32.mrf.mxu0 }
 0x3e0   :  { %v621_v11 = vadd.f32 %v620_v63, %v556_v9 }
 0x3e1   :  { %v662_v10 = vpop.f32.mrf.mxu2  ;;  %v710_v24 = vpop.f32.mrf.mxu1 }
 0x3e2   :  { %v663_v16 = vadd.f32 %v662_v10, %v621_v11 }
 0x3e4   :  { %v705_v19 = vadd.f32 %v704_v13, %v663_v16 }
 0x3e5   :  { %v563_v4 = vpop.f32.mrf.mxu3 }
 0x3e6   :  { %v564_v17 = vadd.f32 %v563_v4, %v512_v12 }
 0x3e7   :  { %v624_v5 = vpop.f32.mrf.mxu0 }
 0x3e8   :  { %v625_v20 = vadd.f32 %v624_v5, %v564_v17 }
 0x3e9   :  { %v667_v18 = vpop.f32.mrf.mxu2  ;;  %v716_v40 = vpop.f32.mrf.mxu1 }
 0x3ea   :  { %v668_v26 = vadd.f32 %v667_v18, %v625_v20 }
 0x3ec   :  { %v711_v29 = vadd.f32 %v710_v24, %v668_v26 }
 0x3ed   :  { %v571_v7 = vpop.f32.mrf.mxu3 }
 0x3ee   :  { %v572_v27 = vadd.f32 %v571_v7, %v514_v21 }
 0x3ef   :  { %v628_v8 = vpop.f32.mrf.mxu0 }
 0x3f0   :  { %v629_v30 = vadd.f32 %v628_v8, %v572_v27 }
 0x3f1   :  { %v672_v32 = vpop.f32.mrf.mxu2  ;;  %v722_v50 = vpop.f32.mrf.mxu1 }
 0x3f2   :  { %v673_v36 = vadd.f32 %v672_v32, %v629_v30 }
 0x3f4   :  { %v717_v41 = vadd.f32 %v716_v40, %v673_v36 }
 0x3f5   :  { %v579_v14 = vpop.f32.mrf.mxu3 }
 0x3f6   :  { %v580_v37 = vadd.f32 %v579_v14, %v516_v31 }
 0x3f7   :  { %v632_v15 = vpop.f32.mrf.mxu0 }
 0x3f8   :  { %v633_v42 = vadd.f32 %v632_v15, %v580_v37 }
 0x3f9   :  { %v677_v45 = vpop.f32.mrf.mxu2 }
 0x3fa   :  { %v678_v48 = vadd.f32 %v677_v45, %v633_v42 }
 0x3fc   :  { %v723_v51 = vadd.f32 %v722_v50, %v678_v48 }
 0x3fd   :  { %v755_v22 = vpop.f32.mrf.mxu3 }
 0x3fe   :  { %v756_v23 = vadd.f32 %v755_v22, %v705_v19 }
 0x3ff   :  { %v792_v25 = vpop.f32.mrf.mxu0 }
 0x400   :  { %v793_v28 = vadd.f32 %v792_v25, %v756_v23 }
 0x402   :  { %807 = vst.msk [vmem:[#allocation7] sm:$0xff] %vm52_vm0, %v793_v28 }
 0x405   :  { %v759_v33 = vpop.f32.mrf.mxu3 }
 0x406   :  { %v760_v34 = vadd.f32 %v759_v33, %v711_v29 }
 0x407   :  { %v796_v35 = vpop.f32.mrf.mxu0 }
 0x408   :  { %v797_v39 = vadd.f32 %v796_v35, %v760_v34 }
 0x40a   :  { %808 = vst.msk [vmem:[#allocation7 + $0x8] sm:$0xff] %vm52_vm0, %v797_v39 }
 0x40d   :  { %v763_v43 = vpop.f32.mrf.mxu3 }
 0x40e   :  { %v764_v44 = vadd.f32 %v763_v43, %v717_v41 }
 0x40f   :  { %v800_v46 = vpop.f32.mrf.mxu0 }
 0x410   :  { %v801_v49 = vadd.f32 %v800_v46, %v764_v44 }
 0x412   :  { %809 = vst.msk [vmem:[#allocation7 + $0x10] sm:$0xff] %vm52_vm0, %v801_v49 }
 0x415   :  { %v767_v52 = vpop.f32.mrf.mxu3 }
 0x416   :  { %v768_v53 = vadd.f32 %v767_v52, %v723_v51 }
 0x417   :  { %v804_v54 = vpop.f32.mrf.mxu0 }
 0x418   :  { %v805_v55 = vadd.f32 %v804_v54, %v768_v53 }
 0x41a   :  { %810 = vst.msk [vmem:[#allocation7 + $0x18] sm:$0xff] %vm52_vm0, %v805_v55 }
 0x41b   :  { %823 = dma.vmem_to_hbm [thread:$0]  %s816_s28, 512, %s818_s3, [#allocation4], %s1025_s17, %s1025_s17, %s1026_s18  }
 0x41c   :  { %1022 = dma.done.wait [#allocation4], 512  }
 0x41d   :  { %1023 = vsyncadd [#allocation4], 4294966784 }
 0x41e   :  { %828 = vsyncpa [#allocation3], 1 }
 0x41f   :  { %829 = vsyncpa [#allocation6], 1 }
 0x420   :  { %830 = vsyncpa [#allocation4], 1 }

</bundles_post_ra>
